<compile_context>
chip_gen: v7x
topology: tpu7x:2x2x1
jax: 0.10.0
libtpu: 0.0.40
codegen_flags: <defaults>
</compile_context>

<pallas_src>
import math
import numpy as np
import jax
import jax.numpy as jnp
from jax.experimental import pallas as pl
from jax.experimental.pallas import tpu as pltpu

# ---------------- hyperparameters (compile-time constants) ----------------
ENC_FEATURE_DIM = 32
HIDDEN_DIM = 32
ACTION_DIM = 4
LOG_STD_MIN = -10.0
LOG_STD_MAX = 2.0
BATCH = 2

_ENC = ENC_FEATURE_DIM
_HID = HIDDEN_DIM
_ACT = ACTION_DIM
_XN_W = 256            # packed activations: obs at lanes [0:32], noise at [128:132]
_OUT_W = 128           # packed (lane-dense) output width
_WB_ROWS = 160         # fused weight + bias slab rows (20 sublane tiles)


# ---------------- Pallas kernel ----------------
def actor_kernel(xn_ref, wb_ref, out_ref):
    # activations (both slices start at a 128-lane tile boundary -> no lane shuffles)
    x = xn_ref[:, 0:_ENC]                      # [BB, 32]
    noise = xn_ref[:, 128:128 + _ACT]          # [BB, 4]

    # fused parameter slab: every piece sits at sublane offset % 8 == 0, lane 0
    w1 = wb_ref[0:32, 0:_HID]                  # [32, 32]
    w2 = wb_ref[32:64, 0:_HID]                 # [32, 32]
    w3m = wb_ref[64:96, 0:_ACT]                # [32, 4]  (mu head)
    w3s = wb_ref[96:128, 0:_ACT]               # [32, 4]  (log_std head)
    b1 = wb_ref[128:129, 0:_HID]               # [1, 32]
    b2 = wb_ref[136:137, 0:_HID]               # [1, 32]
    b3m = wb_ref[144:145, 0:_ACT]              # [1, 4]
    b3s = wb_ref[152:153, 0:_ACT]              # [1, 4]

    # trunk: Linear -> ReLU -> Linear -> ReLU -> Linear (split mu / log_std heads)
    # Kept in f32: at these shapes the kernel is overhead-bound, not MXU-bound.
    # TODO(synk): cast operands to bf16 on v6e/v7x if batch is scaled to >=128.
    h1 = jnp.maximum(jnp.dot(x, w1, preferred_element_type=jnp.float32) + b1, 0.0)
    h2 = jnp.maximum(jnp.dot(h1, w2, preferred_element_type=jnp.float32) + b2, 0.0)
    mu = jnp.dot(h2, w3m, preferred_element_type=jnp.float32) + b3m          # [BB, 4]
    log_std = jnp.dot(h2, w3s, preferred_element_type=jnp.float32) + b3s     # [BB, 4]

    # tanh + rescale of log_std into [LOG_STD_MIN, LOG_STD_MAX]
    log_std = jnp.tanh(log_std)
    log_std = LOG_STD_MIN + 0.5 * (LOG_STD_MAX - LOG_STD_MIN) * (log_std + 1.0)

    # reparameterized sample
    std = jnp.exp(log_std)
    pi = mu + noise * std

    # gaussian_logprob
    log_pi = jnp.sum(-0.5 * noise * noise - log_std, axis=-1, keepdims=True)  # [BB, 1]
    log_pi = log_pi - 0.5 * math.log(2.0 * math.pi) * _ACT

    # squash
    mu_t = jnp.tanh(mu)
    pi_t = jnp.tanh(pi)
    log_pi = log_pi - jnp.sum(
        jnp.log(jnp.maximum(1.0 - pi_t * pi_t, 0.0) + 1e-6), axis=-1, keepdims=True)

    # single lane-dense packed output block -> one output buffer, one HBM DMA
    out_ref[...] = jnp.zeros_like(out_ref)
    out_ref[:, 0:_ACT] = mu_t
    out_ref[:, _ACT:2 * _ACT] = pi_t
    out_ref[:, 2 * _ACT:3 * _ACT] = log_std
    out_ref[:, 3 * _ACT:3 * _ACT + 1] = log_pi


# ---------------- packing helpers (layout plumbing, outside the kernel) ----------------
def pack_obs_noise(obs, noise, b_pad):
    B = obs.shape[0]
    xn = jnp.zeros((b_pad, _XN_W), jnp.float32)
    xn = xn.at[:B, 0:_ENC].set(obs.astype(jnp.float32))
    xn = xn.at[:B, 128:128 + _ACT].set(noise.astype(jnp.float32))
    return xn


def pack_params(w1, b1, w2, b2, w3, b3):
    """w*: [in, out] (transpose of nn.Linear.weight), b*: [out]. Done once."""
    wb = jnp.zeros((_WB_ROWS, 128), jnp.float32)
    wb = wb.at[0:32, 0:_HID].set(w1)
    wb = wb.at[32:64, 0:_HID].set(w2)
    wb = wb.at[64:96, 0:_ACT].set(w3[:, 0:_ACT])            # mu head
    wb = wb.at[96:128, 0:_ACT].set(w3[:, _ACT:2 * _ACT])    # log_std head
    wb = wb.at[128, 0:_HID].set(b1)
    wb = wb.at[136, 0:_HID].set(b2)
    wb = wb.at[144, 0:_ACT].set(b3[0:_ACT])
    wb = wb.at[152, 0:_ACT].set(b3[_ACT:2 * _ACT])
    return wb


# ---------------- wrapper ----------------
def actor_forward(obs, wb, noise, *, block_b=None):
    B = obs.shape[0]
    if block_b is None:
        block_b = 128 if B >= 128 else 8      # f32 sublane alignment; 128 for real batches
    bb = block_b
    b_pad = ((B + bb - 1) // bb) * bb
    xn = pack_obs_noise(obs, noise, b_pad)

    flops = 2 * b_pad * (_ENC * _HID + _HID * _HID + _HID * 2 * _ACT)
    transcendentals = b_pad * 5 * _ACT        # tanh x3, exp, log
    bytes_accessed = 4 * (b_pad * _XN_W + _WB_ROWS * 128 + b_pad * _OUT_W)

    out = pl.pallas_call(
        actor_kernel,
        out_shape=jax.ShapeDtypeStruct((b_pad, _OUT_W), jnp.float32),
        grid_spec=pltpu.PrefetchScalarGridSpec(
            num_scalar_prefetch=0,
            grid=(b_pad // bb,),
            in_specs=[pl.BlockSpec((bb, _XN_W), lambda i: (i, 0)),
                      pl.BlockSpec((_WB_ROWS, 128), lambda i: (0, 0))],
            out_specs=pl.BlockSpec((bb, _OUT_W), lambda i: (i, 0)),
        ),
        compiler_params=pltpu.CompilerParams(
            dimension_semantics=("parallel",)),
        cost_estimate=pl.CostEstimate(
            flops=flops,
            transcendentals=transcendentals,
            bytes_accessed=bytes_accessed),
    )(xn, wb)

    mu = out[:B, 0:_ACT]
    pi = out[:B, _ACT:2 * _ACT]
    log_std = out[:B, 2 * _ACT:3 * _ACT]
    log_pi = out[:B, 3 * _ACT:3 * _ACT + 1]
    return mu, pi, log_pi, log_std


# ---------------- deterministic parameter init (mirrors weight_init) ----------------
def _trunc_normal_linear(key, fan_in, fan_out):
    denoms = (fan_in + fan_out) / 2.0
    std = math.sqrt(1.0 / denoms) / 0.8796256610342398
    return jax.random.truncated_normal(key, -2.0, 2.0, (fan_in, fan_out), jnp.float32) * std


def make_params(key):
    k1, k2, k3 = jax.random.split(key, 3)
    w1 = _trunc_normal_linear(k1, _ENC, _HID)
    w2 = _trunc_normal_linear(k2, _HID, _HID)
    w3 = _trunc_normal_linear(k3, _HID, 2 * _ACT)
    b1 = jnp.zeros((_HID,), jnp.float32)
    b2 = jnp.zeros((_HID,), jnp.float32)
    b3 = jnp.zeros((2 * _ACT,), jnp.float32)
    raw = {"w1": w1, "b1": b1, "w2": w2, "b2": b2, "w3": w3, "b3": b3}
    wb = pack_params(w1, b1, w2, b2, w3, b3)
    return raw, wb


if __name__ == "__main__":
    key = jax.random.PRNGKey(0)
    k_obs, k_params, k_noise = jax.random.split(key, 3)

    obs = jax.random.normal(k_obs, (BATCH, _ENC), jnp.float32)
    raw, wb = make_params(k_params)
    # torch.randn_like(mu) equivalent, drawn deterministically outside the kernel
    noise = jax.random.normal(k_noise, (BATCH, _ACT), jnp.float32)

    fwd = jax.jit(actor_forward)
    mu, pi, log_pi, log_std = fwd(obs, wb, noise)
    jax.block_until_ready((mu, pi, log_pi, log_std))

    # lightweight sanity check against pure-JAX reference (unpacked params)
    def ref(obs, p, noise):
        h1 = jnp.maximum(obs @ p["w1"] + p["b1"], 0.0)
        h2 = jnp.maximum(h1 @ p["w2"] + p["b2"], 0.0)
        out = h2 @ p["w3"] + p["b3"]
        m, ls = out[:, :_ACT], out[:, _ACT:]
        ls = jnp.tanh(ls)
        ls = LOG_STD_MIN + 0.5 * (LOG_STD_MAX - LOG_STD_MIN) * (ls + 1.0)
        std = jnp.exp(ls)
        piraw = m + noise * std
        lp = (jnp.sum(-0.5 * noise ** 2 - ls, -1, keepdims=True)
              - 0.5 * np.log(2 * np.pi) * _ACT)
        mt, pt = jnp.tanh(m), jnp.tanh(piraw)
        lp = lp - jnp.sum(jnp.log(jnp.maximum(1 - pt ** 2, 0.0) + 1e-6), -1, keepdims=True)
        return mt, pt, lp, ls

    r_mu, r_pi, r_lp, r_ls = ref(obs, raw, noise)
    assert np.allclose(mu, r_mu, atol=3e-5), np.abs(np.asarray(mu) - np.asarray(r_mu)).max()
    assert np.allclose(pi, r_pi, atol=3e-5), np.abs(np.asarray(pi) - np.asarray(r_pi)).max()
    assert np.allclose(log_pi, r_lp, atol=3e-4), np.abs(np.asarray(log_pi) - np.asarray(r_lp)).max()
    assert np.allclose(log_std, r_ls, atol=3e-5), np.abs(np.asarray(log_std) - np.asarray(r_ls)).max()

    print("KERNEL_OK")
</pallas_src>

<mosaic_0001>
module attributes {stable_mosaic.version = 11 : i64} {
  func.func @actor_kernel(%arg0: i32, %arg1: memref<8x256xf32, #tpu.memory_space<vmem>>, %arg2: memref<160x128xf32, #tpu.memory_space<vmem>>, %arg3: memref<8x128xf32, #tpu.memory_space<vmem>>) attributes {dimension_semantics = [#tpu.dimension_semantics<parallel>], iteration_bounds = array<i64: 1>, scalar_prefetch = 0 : i64, scratch_operands = 0 : i64, tpu.core_type = #tpu.core_type<tc>, window_params = [{transform_indices = @transform_0, window_bounds = array<i64: 8, 256>}, {pipeline_mode = #tpu.pipeline_mode<synchronous>, transform_indices = @transform_1, window_bounds = array<i64: 160, 128>}, {transform_indices = @transform_2, window_bounds = array<i64: 8, 128>}]} {
    %c0 = arith.constant 0 : index
    %c0_0 = arith.constant 0 : index
    %0 = vector.load %arg1[%c0, %c0_0] : memref<8x256xf32, #tpu.memory_space<vmem>>, vector<8x32xf32>
    %c0_1 = arith.constant 0 : index
    %c128 = arith.constant 128 : index
    %1 = vector.load %arg1[%c0_1, %c128] : memref<8x256xf32, #tpu.memory_space<vmem>>, vector<8x4xf32>
    %c0_2 = arith.constant 0 : index
    %c0_3 = arith.constant 0 : index
    %2 = vector.load %arg2[%c0_2, %c0_3] : memref<160x128xf32, #tpu.memory_space<vmem>>, vector<32x32xf32>
    %c32 = arith.constant 32 : index
    %c0_4 = arith.constant 0 : index
    %3 = vector.load %arg2[%c32, %c0_4] : memref<160x128xf32, #tpu.memory_space<vmem>>, vector<32x32xf32>
    %c64 = arith.constant 64 : index
    %c0_5 = arith.constant 0 : index
    %4 = vector.load %arg2[%c64, %c0_5] : memref<160x128xf32, #tpu.memory_space<vmem>>, vector<32x4xf32>
    %c96 = arith.constant 96 : index
    %c0_6 = arith.constant 0 : index
    %5 = vector.load %arg2[%c96, %c0_6] : memref<160x128xf32, #tpu.memory_space<vmem>>, vector<32x4xf32>
    %c128_7 = arith.constant 128 : index
    %c0_8 = arith.constant 0 : index
    %6 = vector.load %arg2[%c128_7, %c0_8] : memref<160x128xf32, #tpu.memory_space<vmem>>, vector<1x32xf32>
    %c136 = arith.constant 136 : index
    %c0_9 = arith.constant 0 : index
    %7 = vector.load %arg2[%c136, %c0_9] : memref<160x128xf32, #tpu.memory_space<vmem>>, vector<1x32xf32>
    %c144 = arith.constant 144 : index
    %c0_10 = arith.constant 0 : index
    %8 = vector.load %arg2[%c144, %c0_10] : memref<160x128xf32, #tpu.memory_space<vmem>>, vector<1x4xf32>
    %c152 = arith.constant 152 : index
    %c0_11 = arith.constant 0 : index
    %9 = vector.load %arg2[%c152, %c0_11] : memref<160x128xf32, #tpu.memory_space<vmem>>, vector<1x4xf32>
    %cst = arith.constant dense<0.000000e+00> : vector<8x32xf32>
    %10 = tpu.matmul %0, %2, %cst {dimension_numbers = #tpu.dot_dimension_numbers<[1], [0], [0], [1], [0, 0, 1, 1], [], []>} : vector<8x32xf32>, vector<32x32xf32>, vector<8x32xf32> -> vector<8x32xf32>
    %11 = vector.broadcast %6 : vector<1x32xf32> to vector<8x32xf32>
    %12 = arith.addf %10, %11 : vector<8x32xf32>
    %cst_12 = arith.constant 0.000000e+00 : f32
    %13 = vector.broadcast %cst_12 : f32 to vector<8x32xf32>
    %14 = arith.maximumf %12, %13 : vector<8x32xf32>
    %cst_13 = arith.constant dense<0.000000e+00> : vector<8x32xf32>
    %15 = tpu.matmul %14, %3, %cst_13 {dimension_numbers = #tpu.dot_dimension_numbers<[1], [0], [0], [1], [0, 0, 1, 1], [], []>} : vector<8x32xf32>, vector<32x32xf32>, vector<8x32xf32> -> vector<8x32xf32>
    %16 = vector.broadcast %7 : vector<1x32xf32> to vector<8x32xf32>
    %17 = arith.addf %15, %16 : vector<8x32xf32>
    %cst_14 = arith.constant 0.000000e+00 : f32
    %18 = vector.broadcast %cst_14 : f32 to vector<8x32xf32>
    %19 = arith.maximumf %17, %18 : vector<8x32xf32>
    %cst_15 = arith.constant dense<0.000000e+00> : vector<8x4xf32>
    %20 = tpu.matmul %19, %4, %cst_15 {dimension_numbers = #tpu.dot_dimension_numbers<[1], [0], [0], [1], [0, 0, 1, 1], [], []>} : vector<8x32xf32>, vector<32x4xf32>, vector<8x4xf32> -> vector<8x4xf32>
    %21 = vector.broadcast %8 : vector<1x4xf32> to vector<8x4xf32>
    %22 = arith.addf %20, %21 : vector<8x4xf32>
    %cst_16 = arith.constant dense<0.000000e+00> : vector<8x4xf32>
    %23 = tpu.matmul %19, %5, %cst_16 {dimension_numbers = #tpu.dot_dimension_numbers<[1], [0], [0], [1], [0, 0, 1, 1], [], []>} : vector<8x32xf32>, vector<32x4xf32>, vector<8x4xf32> -> vector<8x4xf32>
    %24 = vector.broadcast %9 : vector<1x4xf32> to vector<8x4xf32>
    %25 = arith.addf %23, %24 : vector<8x4xf32>
    %26 = math.tanh %25 : vector<8x4xf32>
    %cst_17 = arith.constant 1.000000e+00 : f32
    %27 = vector.broadcast %cst_17 : f32 to vector<8x4xf32>
    %28 = arith.addf %26, %27 : vector<8x4xf32>
    %cst_18 = arith.constant 6.000000e+00 : f32
    %29 = vector.broadcast %cst_18 : f32 to vector<8x4xf32>
    %30 = arith.mulf %29, %28 : vector<8x4xf32>
    %cst_19 = arith.constant -1.000000e+01 : f32
    %31 = vector.broadcast %cst_19 : f32 to vector<8x4xf32>
    %32 = arith.addf %31, %30 : vector<8x4xf32>
    %33 = math.exp %32 : vector<8x4xf32>
    %34 = arith.mulf %1, %33 : vector<8x4xf32>
    %35 = arith.addf %22, %34 : vector<8x4xf32>
    %cst_20 = arith.constant -5.000000e-01 : f32
    %36 = vector.broadcast %cst_20 : f32 to vector<8x4xf32>
    %37 = arith.mulf %36, %1 : vector<8x4xf32>
    %38 = arith.mulf %37, %1 : vector<8x4xf32>
    %39 = arith.subf %38, %32 : vector<8x4xf32>
    %cst_21 = arith.constant dense<0.000000e+00> : vector<8xf32>
    %40 = vector.multi_reduction <add>, %39, %cst_21 [1] : vector<8x4xf32> to vector<8xf32>
    %41 = vector.shape_cast %40 : vector<8xf32> to vector<8x1xf32>
    %cst_22 = arith.constant 3.67575407 : f32
    %42 = vector.broadcast %cst_22 : f32 to vector<8x1xf32>
    %43 = arith.subf %41, %42 : vector<8x1xf32>
    %44 = math.tanh %22 : vector<8x4xf32>
    %45 = math.tanh %35 : vector<8x4xf32>
    %46 = arith.mulf %45, %45 : vector<8x4xf32>
    %cst_23 = arith.constant 1.000000e+00 : f32
    %47 = vector.broadcast %cst_23 : f32 to vector<8x4xf32>
    %48 = arith.subf %47, %46 : vector<8x4xf32>
    %cst_24 = arith.constant 0.000000e+00 : f32
    %49 = vector.broadcast %cst_24 : f32 to vector<8x4xf32>
    %50 = arith.maximumf %48, %49 : vector<8x4xf32>
    %cst_25 = arith.constant 9.99999997E-7 : f32
    %51 = vector.broadcast %cst_25 : f32 to vector<8x4xf32>
    %52 = arith.addf %50, %51 : vector<8x4xf32>
    %53 = math.log %52 : vector<8x4xf32>
    %cst_26 = arith.constant dense<0.000000e+00> : vector<8xf32>
    %54 = vector.multi_reduction <add>, %53, %cst_26 [1] : vector<8x4xf32> to vector<8xf32>
    %55 = vector.shape_cast %54 : vector<8xf32> to vector<8x1xf32>
    %56 = arith.subf %43, %55 : vector<8x1xf32>
    %cst_27 = arith.constant 0.000000e+00 : f32
    %57 = vector.broadcast %cst_27 : f32 to vector<8x128xf32>
    %c0_28 = arith.constant 0 : index
    %c0_29 = arith.constant 0 : index
    %58 = vector.load %arg3[%c0_28, %c0_29] : memref<8x128xf32, #tpu.memory_space<vmem>>, vector<8x128xf32>
    tpu.vector_store %arg3[%c0_28, %c0_29], %57 {strides = array<i32>} : memref<8x128xf32, #tpu.memory_space<vmem>>, vector<8x128xf32>,
    %c0_30 = arith.constant 0 : index
    %c0_31 = arith.constant 0 : index
    %59 = vector.load %arg3[%c0_30, %c0_31] : memref<8x128xf32, #tpu.memory_space<vmem>>, vector<8x4xf32>
    tpu.vector_store %arg3[%c0_30, %c0_31], %44 {strides = array<i32>} : memref<8x128xf32, #tpu.memory_space<vmem>>, vector<8x4xf32>,
    %c0_32 = arith.constant 0 : index
    %c4 = arith.constant 4 : index
    %60 = vector.load %arg3[%c0_32, %c4] : memref<8x128xf32, #tpu.memory_space<vmem>>, vector<8x4xf32>
    tpu.vector_store %arg3[%c0_32, %c4], %45 {strides = array<i32>} : memref<8x128xf32, #tpu.memory_space<vmem>>, vector<8x4xf32>,
    %c0_33 = arith.constant 0 : index
    %c8 = arith.constant 8 : index
    %61 = vector.load %arg3[%c0_33, %c8] : memref<8x128xf32, #tpu.memory_space<vmem>>, vector<8x4xf32>
    tpu.vector_store %arg3[%c0_33, %c8], %32 {strides = array<i32>} : memref<8x128xf32, #tpu.memory_space<vmem>>, vector<8x4xf32>,
    %c0_34 = arith.constant 0 : index
    %c12 = arith.constant 12 : index
    %62 = vector.load %arg3[%c0_34, %c12] : memref<8x128xf32, #tpu.memory_space<vmem>>, vector<8x1xf32>
    tpu.vector_store %arg3[%c0_34, %c12], %56 {strides = array<i32>} : memref<8x128xf32, #tpu.memory_space<vmem>>, vector<8x1xf32>,
    return
  }
  func.func @transform_0(%arg0: i32) -> (i32, i32) {
    %c0_i32 = arith.constant 0 : i32
    %c0_i32_0 = arith.constant 0 : i32
    return %arg0, %c0_i32 : i32, i32
  }
  func.func @transform_1(%arg0: i32) -> (i32, i32) {
    %c0_i32 = arith.constant 0 : i32
    %c0_i32_0 = arith.constant 0 : i32
    %c0_i32_1 = arith.constant 0 : i32
    return %c0_i32, %c0_i32_0 : i32, i32
  }
  func.func @transform_2(%arg0: i32) -> (i32, i32) {
    %c0_i32 = arith.constant 0 : i32
    %c0_i32_0 = arith.constant 0 : i32
    return %arg0, %c0_i32 : i32, i32
  }
}

</mosaic_0001>

<bundles_post_ra>
// kernel: actor_forward.1
= control target key start
LH: loop header
LB: loop body
LE: loop exit
PB: predicated region body
PF: predicated region fallthrough
CT: control target
= control target key end

     0   :  { %7 = vsyncpa [#allocation3], 0  ;;  %s542_s9 = smov [#allocation2]   ;;  %s610_s0 = inlined_call_operand.vmem [shape: f32[8,256], index: 0, kind: input, shape index: {}]   ;;  %s611_s1 = inlined_call_operand.hbm [shape: f32[160,128], index: 1, kind: input, shape index: {}]   ;;  %s612_s2 = inlined_call_operand.vmem [shape: f32[8,128], index: 2, kind: output, shape index: {}]  }
   0x1   :  { %s15_s10 = sshll.u32 %s542_s9, 4  ;;  %s518_s13 = scalar_lea.hbm %s611_s1, 2560  ;;  %s16_s10 = int_to_ptr.vmem [resolvable:$true] %s15_s10 }
   0x2   :  { %p519_p0 = scmp.ne.s32.totalorder %s611_s1, %s518_s13  ;;  %p522_p1 = scmp.lt.u32.totalorder %s518_s13, %s611_s1 }
   0x4   :  { %p524_p2 = pnand %p522_p1, %p519_p0 }
   0x6   :  { %527 = shalt.err (!%p524_p2)
}
   0x7   :  { %s528_s18 = scalar_lea.vmem %s16_s10, 2560  ;;  %p533_p4 = scmp.lt.s32.totalorder %s16_s10, %s16_s10 }
   0x8   :  { %p529_p3 = scmp.ne.s32.totalorder %s16_s10, %s528_s18  ;;  %p534_p5 = scmp.lt.s32.totalorder %s528_s18, %s528_s18 }
   0xa   :  { %p535_p6 = por %p534_p5, %p533_p4 }
   0xc   :  { %p536_p7 = pnand %p535_p6, %p529_p3 }
   0xe   :  { %539 = shalt.err (!%p536_p7)
}
   0xf   :  { %s543_s19 = smov 128   ;;  %s544_s20 = smov 8  }
  0x10   :  { %21 = dma.hbm_to_vmem [thread:$0]  %s611_s1, 2560, %s16_s10, [#allocation3], %s543_s19, %s543_s19, %s544_s20  }
  0x11   :  { %540 = dma.done.wait [#allocation3], 2560  }
  0x12   :  { %541 = vsyncadd [#allocation3], 4294964736  ;;  %v545_v0 = vmov 0.0|0.0   ;;  %vm546_vm0 = vmmov 0   ;;  %v547_v1 = vmov 0.0   ;;  %v27_v2 = vld [vmem:[#allocation2] sm:$0xff] }
  0x13   :  { %477 = vmatprep.subr.bf16.mxu0 %v545_v0  ;;  %441 = vmatprep.mubr.msk.f32.mxu0 %vm546_vm0, %v547_v1  ;;  %383 = vst [vmem:[%s612_s2] sm:$0xff] %v547_v1  ;;  %v28_v3 = vld [vmem:[#allocation2 + $0x8] sm:$0xff]  ;;  %v29_v4 = vld [vmem:[#allocation2 + $0x10] sm:$0xff]  ;;  %v30_v6 = vld [vmem:[#allocation2 + $0x18] sm:$0xff]  ;;  %vm51_vm1 = vcmask 261120   ;;  %vm366_vm2 = vcmask 31744   ;;  %vm389_vm3 = vcmask 64544  }
  0x14   :  { %483 = vmatprep.subr.bf16.mxu1 %v545_v0  ;;  %452 = vmatprep.mubr.msk.f32.mxu1 %vm546_vm0, %v547_v1  ;;  %v478_v5 = vpack.c.bf16 %v28_v3, %v27_v2  ;;  %v31_v7 = vld [vmem:[#allocation2 + $0x20] sm:$0xff]  ;;  %v32_v8 = vld [vmem:[#allocation2 + $0x28] sm:$0xff]  ;;  %v481_v9 = vpack.c.bf16 %v30_v6, %v29_v4  ;;  %v33_v12 = vld [vmem:[#allocation2 + $0x30] sm:$0xff]  ;;  %vm395_vm4 = vcmask 97344   ;;  %vm397_vm5 = vcmask 105568  }
  0x15   :  { %v484_v10 = vpack.c.bf16 %v32_v8, %v31_v7  ;;  %v25_v11 = vld [vmem:[%s610_s0] sm:$0xff]  ;;  %v34_v13 = vld [vmem:[#allocation2 + $0x38] sm:$0xff]  ;;  %v36_v16 = vld [vmem:[#allocation2 + $0x48] sm:$0xff] }
  0x16   :  { %479 = vmatpush3.bf16.msra.mxu0 %v478_v5  ;;  %v487_v14 = vpack.c.bf16 %v34_v13, %v33_v12  ;;  %v35_v15 = vld [vmem:[#allocation2 + $0x40] sm:$0xff]  ;;  %v40_v20 = vld [vmem:[#allocation2 + $0x68] sm:$0xff]  ;;  %v37_v26 = vld [vmem:[#allocation2 + $0x50] sm:$0xff] }
  0x17   :  { %480 = vmatprep.subr.bf16.mxu0 %v545_v0  ;;  %485 = vmatpush3.bf16.msra.mxu1 %v484_v10  ;;  %v490_v17 = vpack.c.bf16 %v36_v16, %v35_v15  ;;  %v404_v18 = vld [vmem:[#allocation2 + $0x80] ss:$0 sm:$0xff]  ;;  %v38_v27 = vld [vmem:[#allocation2 + $0x58] sm:$0xff]  ;;  %v41_v28 = vld [vmem:[#allocation2 + $0x70] sm:$0xff] }
  0x18   :  { %486 = vmatprep.subr.bf16.mxu1 %v545_v0  ;;  %v39_v19 = vld [vmem:[#allocation2 + $0x60] sm:$0xff]  ;;  %v493_v29 = vpack.c.bf16 %v38_v27, %v37_v26  ;;  %v42_v30 = vld [vmem:[#allocation2 + $0x78] sm:$0xff]  ;;  %v406_v32 = vld [vmem:[#allocation2 + $0x88] ss:$0 sm:$0xff] }
  0x19   :  { %v496_v24 = vpack.c.bf16 %v40_v20, %v39_v19  ;;  %v499_v31 = vpack.c.bf16 %v42_v30, %v41_v28  ;;  %v408_v37 = vld [vmem:[#allocation2 + $0x90] ss:$0 sm:$0xff]  ;;  %v410_v38 = vld [vmem:[#allocation2 + $0x98] ss:$0 sm:$0xff]  ;;  %v26_v45 = vld [vmem:[%s610_s0 + $0x8] sm:$0xff]  ;;  %s548_s0 = smov 4  }
  0x1a   :  { %482 = vmatpush3.bf16.msra.mxu0 %v481_v9  ;;  %v363_v47 = vmul.f32 -0.5, %v26_v45 }
  0x1b   :  { %489 = vmatprep.subr.bf16.mxu0 %v545_v0  ;;  %488 = vmatpush3.bf16.msra.mxu1 %v487_v14 }
  0x1c   :  { %495 = vmatprep.subr.bf16.mxu1 %v545_v0  ;;  %v364_v51 = vmul.f32 %v363_v47, %v26_v45 }
  0x1d   :  { %442 = vmatmul.mubr.msk.f32.vlgmr.msra.gmra.mrb[0].mxu0 %vm51_vm1, %v25_v11 }
  0x1e   :  { %463 = vmatprep.mubr.msk.f32.mxu0 %vm546_vm0, %v547_v1  ;;  %491 = vmatpush3.bf16.msra.mxu0 %v490_v17 }
  0x1f   :  { %492 = vmatprep.subr.bf16.mxu0 %v545_v0 }
  0x22   :  { %494 = vmatpush3.bf16.msra.mxu0 %v493_v29 }
  0xf0   :  { %v121_v21 = vpop.f32.mrb[0].mxu0 }
  0xf1   :  { %v122_v22 = vadd.f32 %v404_v18, %v121_v21  ;;  %v443_v23 = vpop.f32.mrb[1].mxu0 }
  0xf3   :  { %v125_v25 = vmax.f32 %v122_v22, 0.0 }
  0xf5   :  { %453 = vmatmul.mubr.msk.f32.vlgmr.msra.gmra.mrb[0].mxu1 %vm51_vm1, %v125_v25 }
  0xf6   :  { %497 = vmatpush3.bf16.msra.mxu1 %v496_v24  ;;  %474 = vmatprep.mubr.msk.f32.mxu1 %vm546_vm0, %v547_v1 }
  0xf7   :  { %498 = vmatprep.subr.bf16.mxu1 %v545_v0 }
  0xfa   :  { %500 = vmatpush3.bf16.msra.mxu1 %v499_v31 }
 0x1c8   :  { %v199_v33 = vpop.f32.mrb[0].mxu1 }
 0x1c9   :  { %v200_v34 = vadd.f32 %v406_v32, %v199_v33  ;;  %v454_v35 = vpop.f32.mrb[1].mxu1 }
 0x1cb   :  { %v203_v36 = vmax.f32 %v200_v34, 0.0 }
 0x1cd   :  { %464 = vmatmul.mubr.msk.f32.vlgmr.msra.gmra.mrb[2].mxu0 %vm51_vm1, %v203_v36  ;;  %475 = vmatmul.mubr.msk.f32.vlgmr.msra.gmra.mrb[2].mxu1 %vm51_vm1, %v203_v36 }
 0x2a0   :  { %v277_v39 = vpop.f32.mrb[2].mxu0  ;;  %v351_v40 = vpop.f32.mrb[2].mxu1 }
 0x2a1   :  { %v278_v41 = vadd.f32 %v408_v37, %v277_v39  ;;  %v352_v42 = vadd.f32 %v410_v38, %v351_v40  ;;  %v465_v43 = vpop.f32.mrb[3].mxu0  ;;  %v476_v44 = vpop.f32.mrb[3].mxu1 }
 0x2a3   :  { %508 = vtanh.f32 %v278_v41 }
 0x2a4   :  { %510 = vtanh.f32 %v352_v42 }
 0x2ad   :  { %v509_v46 = vpop.eup %508 }
 0x2ae   :  { %v511_v48 = vpop.eup %510  ;;  %384 = vst.msk [vmem:[%s612_s2] sm:$0xff] %vm366_vm2, %v509_v46 }
 0x2af   :  { %v356_v49 = vadd.f32 1.0, %v511_v48 }
 0x2b1   :  { %v357_v50 = vmul.f32 6.0, %v356_v49 }
 0x2b3   :  { %v358_v52 = vadd.f32 -10.0, %v357_v50 }
 0x2b5   :  { %v359_v53 = vmul.f32 1.442695, %v358_v52  ;;  %v365_v54 = vsub.f32 %v364_v51, %v358_v52 }
 0x2b7   :  { %512 = vpow2.f32 %v359_v53  ;;  %v367_v55 = vsel %vm366_vm2, %v365_v54, 0.0 }
 0x2b8   :  { %368 = vadd.xlane.f32.xlu0 %v367_v55 }
 0x2c1   :  { %v513_v56 = vpop.eup %512 }
 0x2c2   :  { %v361_v57 = vmul.f32 %v513_v56, %v26_v45 }
 0x2c4   :  { %v362_v58 = vadd.f32 %v361_v57, %v278_v41 }
 0x2c6   :  { %514 = vtanh.f32 %v362_v58 }
 0x2d0   :  { %v515_v59 = vpop.eup %514 }
 0x2d1   :  { %386 = vrot.lane.b32.xlu1 %v515_v59, %s548_s0  ;;  %v373_v60 = vmul.f32 %v515_v59, %v515_v59 }
 0x2d3   :  { %v374_v61 = vsub.f32 1.0, %v373_v60 }
 0x2d5   :  { %392 = vrot.lane.b32.xlu1 %v358_v52, %s544_s20  ;;  %v375_v62 = vmax.f32 %v374_v61, 0.0 }
 0x2d7   :  { %v376_v63 = vadd.f32 1e-06, %v375_v62 }
 0x2d9   :  { %516 = vlog2.f32 %v376_v63 }
 0x2e3   :  { %v517_v0 = vpop.eup %516 }
 0x2e4   :  { %v378_v1 = vmul.f32 0.6931472, %v517_v0 }
 0x2e6   :  { %v379_v2 = vsel %vm366_vm2, %v378_v1, 0.0 }
 0x2e7   :  { %380 = vadd.xlane.f32.xlu0 %v379_v2 }
 0x343   :  { %v387_v3 = vpop.permute.xlu1 %386 }
 0x344   :  { %390 = vst.msk [vmem:[%s612_s2] sm:$0xff] %vm389_vm3, %v387_v3 }
 0x345   :  { %v369_v5 = vpop.xlane.xlu0 %368 }
 0x346   :  { %v412_v6 = vadd.f32 -3.675754, %v369_v5 }
 0x347   :  { %v393_v4 = vpop.permute.xlu1 %392 }
 0x348   :  { %396 = vst.msk [vmem:[%s612_s2] sm:$0xff] %vm395_vm4, %v393_v4 }
 0x374   :  { %v381_v7 = vpop.xlane.xlu0 %380 }
 0x375   :  { %v382_v8 = vsub.f32 %v412_v6, %v381_v7 }
 0x377   :  { %398 = vst.msk [vmem:[%s612_s2] sm:$0xff] %vm397_vm5, %v382_v8 }
 0x378   :  { %403 = vsyncpa [#allocation3], 1 }

</bundles_post_ra>
